<compile_context>
chip_gen: v5e
topology: v5e:2x2
jax: 0.10.0
libtpu: 0.0.40
codegen_flags: <defaults>
</compile_context>

<pallas_src>
import functools

import jax
import jax.numpy as jnp
from jax import lax
from jax.experimental import pallas as pl
from jax.experimental.pallas import tpu as pltpu


# --------------------------------------------------------------------------- #
# helpers
# --------------------------------------------------------------------------- #
def _sublane_multiple(dtype):
    # f32 -> 8, bf16 -> 16, int8/fp8 -> 32 (packed dtypes pack along sublanes).
    return max(8, 32 // jnp.dtype(dtype).itemsize)


def _pick_tile(n, cap, dtype):
    """Largest divisor of n that is <= cap and a multiple of the dtype's
    sublane packing factor; falls back to the full extent if none exists."""
    if n <= cap:
        return n
    m = _sublane_multiple(dtype)
    for t in range(cap, m - 1, -1):
        if n % t == 0 and t % m == 0:
            return t
    # TODO(synk): for awkward (prime-ish) extents switch to a pl.cdiv grid with
    #             a masked tail instead of degrading to the full extent.
    return n


def _vmem_budget_bytes():
    """Generation-aware VMEM ceiling: ~78% of physical capacity (128 MiB on
    v5e/v6e, 64 MiB on v7x); conservative v7x-safe fallback when unknown."""
    cap = None
    try:
        cap = getattr(pltpu.get_tpu_info(), "vmem_capacity_bytes", None)
    except Exception:
        cap = None
    if not cap:
        cap = 64 << 20
    return int(cap * 0.78)


def _default_seq_tile_cap():
    # Bigger streamed row blocks on 128 MiB parts; keep 512 on v7x.
    return 1024 if _vmem_budget_bytes() >= (80 << 20) else 512


def _compiler_params(dim_semantics, est_bytes):
    limit = int(min(max(2 * est_bytes + (8 << 20), 32 << 20), _vmem_budget_bytes()))
    return pltpu.CompilerParams(dimension_semantics=dim_semantics,
                                vmem_limit_bytes=limit)


# --------------------------------------------------------------------------- #
# kernels
# --------------------------------------------------------------------------- #
def _qkv_head_proj_kernel(xq_ref, xk_ref, xv_ref, wq_ref, wk_ref, wv_ref,
                          q_ref, k_ref, v_ref, *, q_scale):
    # One (seq_tile, D) activation tile x one (D, hd) per-head weight slice;
    # native-dtype MXU feeds, f32 accumulation.  Output is head-major so no
    # host-side split transpose is ever needed.
    q = jnp.dot(xq_ref[0], wq_ref[0], preferred_element_type=jnp.float32)
    k = jnp.dot(xk_ref[0], wk_ref[0], preferred_element_type=jnp.float32)
    v = jnp.dot(xv_ref[0], wv_ref[0], preferred_element_type=jnp.float32)
    # Fold the 1/head_dim attention scale into q once.
    q_ref[0, 0] = (q * q_scale).astype(q_ref.dtype)
    k_ref[0, 0] = k.astype(k_ref.dtype)
    v_ref[0, 0] = v.astype(v_ref.dtype)


def _qkv_head_proj_self_kernel(x_ref, wq_ref, wk_ref, wv_ref,
                               q_ref, k_ref, v_ref, *, q_scale):
    # Self-attention: the activation block is DMA'd once and reused 3x.
    x = x_ref[0]
    q = jnp.dot(x, wq_ref[0], preferred_element_type=jnp.float32)
    k = jnp.dot(x, wk_ref[0], preferred_element_type=jnp.float32)
    v = jnp.dot(x, wv_ref[0], preferred_element_type=jnp.float32)
    q_ref[0, 0] = (q * q_scale).astype(q_ref.dtype)
    k_ref[0, 0] = k.astype(k_ref.dtype)
    v_ref[0, 0] = v.astype(v_ref.dtype)


def _flash_attn_kernel(q_ref, k_ref, v_ref, o_ref, m_sc, l_sc, acc_sc):
    # Grid: (B, H, q_tiles, kv_tiles); kv is the (arbitrary) reduction axis
    # with an online-softmax accumulator resident in VMEM scratch.
    kv_i = pl.program_id(3)

    @pl.when(kv_i == 0)
    def _():
        m_sc[...] = jnp.full_like(m_sc, -jnp.inf)
        l_sc[...] = jnp.zeros_like(l_sc)
        acc_sc[...] = jnp.zeros_like(acc_sc)

    q = q_ref[0, 0]          # (TQ, hd) — 1/head_dim scale already folded in
    k = k_ref[0, 0]          # (TKV, hd)
    v = v_ref[0, 0]          # (TKV, hd)

    # scores = q @ k^T, f32 accumulation on the MXU.
    s = lax.dot_general(q, k, (((1,), (1,)), ((), ())),
                        preferred_element_type=jnp.float32)      # (TQ, TKV)

    # TODO(synk): attention mask (mask=None in this forward) and dropout
    #             (identity in eval mode) are not implemented.
    m_prev = m_sc[...]
    m_new = jnp.maximum(m_prev, jnp.max(s, axis=-1, keepdims=True))
    alpha = jnp.exp(m_prev - m_new)
    p = jnp.exp(s - m_new)
    l_sc[...] = alpha * l_sc[...] + jnp.sum(p, axis=-1, keepdims=True)
    acc_sc[...] = alpha * acc_sc[...] + jnp.dot(
        p.astype(v.dtype), v, preferred_element_type=jnp.float32)
    m_sc[...] = m_new

    @pl.when(kv_i == pl.num_programs(3) - 1)
    def _():
        # Exact normalization (the approx vrcp was outside reference tolerance
        # on some data); this runs once per (b, h, q-tile) so it is cheap.
        o_ref[0, 0] = (acc_sc[...] / l_sc[...]).astype(o_ref.dtype)


def _out_proj_kernel(x_ref, wo_ref, o_ref, acc_ref):
    # Fused head-merge + output projection: reduce over the head grid axis
    # into a resident (seq_tile, D) f32 accumulator (pl.when init/finalize).
    h = pl.program_id(2)

    @pl.when(h == 0)
    def _():
        acc_ref[...] = jnp.zeros_like(acc_ref)

    acc_ref[...] += jnp.dot(x_ref[0, 0], wo_ref[0],
                            preferred_element_type=jnp.float32)

    @pl.when(h == pl.num_programs(2) - 1)
    def _():
        o_ref[0] = acc_ref[...].astype(o_ref.dtype)


# --------------------------------------------------------------------------- #
# wrappers (pallas_call plumbing)
# --------------------------------------------------------------------------- #
def _project_qkv(xq, xk, xv, wq_h, wk_h, wv_h, *, head_dim, seq_tile, self_attn):
    B, S, D = xq.shape
    H = wq_h.shape[0]
    # Head axis innermost: the activation block index is unchanged across h,
    # so Pallas keeps it resident and only the small (D, hd) weight slices move.
    grid = (B, S // seq_tile, H)

    x_spec = pl.BlockSpec((1, seq_tile, D), lambda b, si, h: (b, si, 0))
    w_spec = pl.BlockSpec((1, D, head_dim), lambda b, si, h: (h, 0, 0))
    o_spec = pl.BlockSpec((1, 1, seq_tile, head_dim), lambda b, si, h: (b, h, si, 0))

    out_shape = tuple(jax.ShapeDtypeStruct((B, H, S, head_dim), xq.dtype)
                      for _ in range(3))
    q_scale = 1.0 / float(head_dim)

    itm = xq.dtype.itemsize
    n_act = 1 if self_attn else 3
    est = (2 * n_act * seq_tile * D + 6 * D * head_dim
           + 6 * seq_tile * head_dim) * itm

    rows = B * S
    cost = pl.CostEstimate(
        flops=int(6 * rows * D * D),
        transcendentals=0,
        bytes_accessed=int((n_act * rows * D + 3 * D * D + 3 * rows * D) * itm))

    if self_attn:
        kernel = functools.partial(_qkv_head_proj_self_kernel, q_scale=q_scale)
        in_specs = [x_spec, w_spec, w_spec, w_spec]
        args = (xq, wq_h, wk_h, wv_h)
    else:
        kernel = functools.partial(_qkv_head_proj_kernel, q_scale=q_scale)
        in_specs = [x_spec, x_spec, x_spec, w_spec, w_spec, w_spec]
        args = (xq, xk, xv, wq_h, wk_h, wv_h)

    return pl.pallas_call(
        kernel,
        out_shape=out_shape,
        grid=grid,
        in_specs=in_specs,
        out_specs=(o_spec, o_spec, o_spec),
        compiler_params=_compiler_params(("parallel", "parallel", "parallel"), est),
        cost_estimate=cost,
    )(*args)


def _flash_attention(q, k, v, *, tq, tkv):
    B, H, S, hd = q.shape
    grid = (B, H, S // tq, S // tkv)
    q_spec = pl.BlockSpec((1, 1, tq, hd), lambda b, h, qi, ki: (b, h, qi, 0))
    kv_spec = pl.BlockSpec((1, 1, tkv, hd), lambda b, h, qi, ki: (b, h, ki, 0))
    o_spec = pl.BlockSpec((1, 1, tq, hd), lambda b, h, qi, ki: (b, h, qi, 0))

    itm = q.dtype.itemsize
    est = (2 * tq * hd + 4 * tkv * hd) * itm + (tq * (2 + hd) + tq * tkv) * 4

    n_q_tiles = S // tq
    cost = pl.CostEstimate(
        flops=int(4 * B * H * S * S * hd),
        transcendentals=int(B * H * S * S),
        bytes_accessed=int((B * H * S * hd) * (2 + 2 * n_q_tiles) * itm))

    # TODO(synk): for head_dim < 128, pack 128/head_dim heads per grid step
    #             (lane-dense scores/output, fuller MXU N width) — the biggest
    #             remaining per-chip lever on v6e/v7x.
    return pl.pallas_call(
        _flash_attn_kernel,
        out_shape=jax.ShapeDtypeStruct((B, H, S, hd), q.dtype),
        grid=grid,
        in_specs=[q_spec, kv_spec, kv_spec],
        out_specs=o_spec,
        scratch_shapes=[
            pltpu.VMEM((tq, 1), jnp.float32),   # running max
            pltpu.VMEM((tq, 1), jnp.float32),   # running denom
            pltpu.VMEM((tq, hd), jnp.float32),  # f32 output accumulator
        ],
        compiler_params=_compiler_params(
            ("parallel", "parallel", "parallel", "arbitrary"), est),
        cost_estimate=cost,
    )(q, k, v)


def _output_proj(attn, wo_h, *, seq_tile, out_dtype):
    B, H, S, hd = attn.shape
    D = wo_h.shape[-1]
    # Head axis is the reduction (innermost, arbitrary): the output block stays
    # resident while per-head contributions accumulate, fusing the head merge.
    grid = (B, S // seq_tile, H)

    x_spec = pl.BlockSpec((1, 1, seq_tile, hd), lambda b, si, h: (b, h, si, 0))
    w_spec = pl.BlockSpec((1, hd, D), lambda b, si, h: (h, 0, 0))
    o_spec = pl.BlockSpec((1, seq_tile, D), lambda b, si, h: (b, si, 0))

    itm = attn.dtype.itemsize
    est = (2 * seq_tile * hd + 2 * hd * D + 2 * seq_tile * D) * itm \
        + seq_tile * D * 4

    rows = B * S
    cost = pl.CostEstimate(
        flops=int(2 * rows * D * D),
        transcendentals=0,
        bytes_accessed=int((2 * rows * D + D * D) * itm))

    return pl.pallas_call(
        _out_proj_kernel,
        out_shape=jax.ShapeDtypeStruct((B, S, D), out_dtype),
        grid=grid,
        in_specs=[x_spec, w_spec],
        out_specs=o_spec,
        scratch_shapes=[pltpu.VMEM((seq_tile, D), jnp.float32)],
        compiler_params=_compiler_params(("parallel", "parallel", "arbitrary"), est),
        cost_estimate=cost,
    )(attn, wo_h)


def multi_head_attention(query, key, value, wq, wk, wv, wo, *, num_heads,
                         self_attention=False, seq_tile_cap=None,
                         q_tile_cap=128, kv_tile_cap=256):
    """query/key/value: (B, S, D); wq/wk/wv/wo: (D, D). Returns (B, S, D)."""
    B, S, D = query.shape
    assert D % num_heads == 0
    head_dim = D // num_heads

    # Explicit flag: object identity never holds under jit (distinct tracers),
    # so the de-duplicated QKV path must be requested by the caller; identity
    # is kept as a best-effort fallback for eager callers.
    self_attn = bool(self_attention) or ((query is key) and (key is value))

    if seq_tile_cap is None:
        seq_tile_cap = _default_seq_tile_cap()
    seq_tile = _pick_tile(S, seq_tile_cap, query.dtype)
    tq = _pick_tile(S, q_tile_cap, query.dtype)
    tkv = _pick_tile(S, kv_tile_cap, query.dtype)

    # One-time tiny weight reshapes to head-major form: (H, D, hd) for Q/K/V,
    # (H, hd, D) for the output projection.  This is what lets the kernels
    # read/write head-major activations directly — no HBM transpose passes
    # over q/k/v or the attention context.
    wq_h = wq.reshape(D, num_heads, head_dim).transpose(1, 0, 2)
    wk_h = wk.reshape(D, num_heads, head_dim).transpose(1, 0, 2)
    wv_h = wv.reshape(D, num_heads, head_dim).transpose(1, 0, 2)
    wo_h = wo.reshape(num_heads, head_dim, D)

    q, k, v = _project_qkv(query, key, value, wq_h, wk_h, wv_h,
                           head_dim=head_dim, seq_tile=seq_tile,
                           self_attn=self_attn)

    attn = _flash_attention(q, k, v, tq=tq, tkv=tkv)

    return _output_proj(attn, wo_h, seq_tile=seq_tile, out_dtype=query.dtype)


# --------------------------------------------------------------------------- #
# pure-JAX reference (mirrors the PyTorch forward: mask=None, eval mode)
# --------------------------------------------------------------------------- #
def _reference_mha(query, key, value, wq, wk, wv, wo, *, num_heads):
    B, S, D = query.shape
    hd = D // num_heads

    def proj(x, w):
        y = jnp.matmul(x, w)
        return y.reshape(B, S, num_heads, hd).transpose(0, 2, 1, 3)

    q, k, v = proj(query, wq), proj(key, wk), proj(value, wv)
    scores = jnp.matmul(q, jnp.swapaxes(k, -2, -1)) / float(hd)
    p = jax.nn.softmax(scores, axis=-1)
    x = jnp.matmul(p, v)
    x = x.transpose(0, 2, 1, 3).reshape(B, S, D)
    return jnp.matmul(x, wo)


if __name__ == "__main__":
    B, S, D, H = 2, 8, 32, 4   # batch, seq, model_dim, num_attention_heads

    key0 = jax.random.PRNGKey(0)
    k_q, k_k, k_v, k_wq, k_wk, k_wv, k_wo = jax.random.split(key0, 7)

    query = jax.random.normal(k_q, (B, S, D), dtype=jnp.float32)
    key_in = jax.random.normal(k_k, (B, S, D), dtype=jnp.float32)
    value = jax.random.normal(k_v, (B, S, D), dtype=jnp.float32)

    # glorot_uniform init for the 4 LinearLayers (in=out=D, no bias).
    r = (3.0 / D) ** 0.5
    def glorot(k):
        return jax.random.uniform(k, (D, D), dtype=jnp.float32, minval=-r, maxval=r)

    wq, wk, wv, wo = glorot(k_wq), glorot(k_wk), glorot(k_wv), glorot(k_wo)

    # Cross-attention path (3 distinct inputs).
    out = multi_head_attention(query, key_in, value, wq, wk, wv, wo, num_heads=H)
    out = jax.block_until_ready(out)
    ref = _reference_mha(query, key_in, value, wq, wk, wv, wo, num_heads=H)
    assert out.shape == (B, S, D)
    assert jnp.allclose(out, ref, atol=2e-3, rtol=2e-3), "cross-attention mismatch"

    # Self-attention path (explicit flag -> de-duplicated single-input QKV kernel).
    out_self = multi_head_attention(query, query, query, wq, wk, wv, wo,
                                    num_heads=H, self_attention=True)
    out_self = jax.block_until_ready(out_self)
    ref_self = _reference_mha(query, query, query, wq, wk, wv, wo, num_heads=H)
    assert jnp.allclose(out_self, ref_self, atol=2e-3, rtol=2e-3), "self-attention mismatch"

    print("KERNEL_OK")
</pallas_src>

<mosaic_0001>
module attributes {stable_mosaic.version = 11 : i64} {
  func.func @_qkv_head_proj_kernel(%arg0: i32, %arg1: i32, %arg2: i32, %arg3: memref<1x8x32xf32, #tpu.memory_space<vmem>>, %arg4: memref<1x8x32xf32, #tpu.memory_space<vmem>>, %arg5: memref<1x8x32xf32, #tpu.memory_space<vmem>>, %arg6: memref<1x32x8xf32, #tpu.memory_space<vmem>>, %arg7: memref<1x32x8xf32, #tpu.memory_space<vmem>>, %arg8: memref<1x32x8xf32, #tpu.memory_space<vmem>>, %arg9: memref<1x1x8x8xf32, #tpu.memory_space<vmem>>, %arg10: memref<1x1x8x8xf32, #tpu.memory_space<vmem>>, %arg11: memref<1x1x8x8xf32, #tpu.memory_space<vmem>>) attributes {dimension_semantics = [#tpu.dimension_semantics<parallel>, #tpu.dimension_semantics<parallel>, #tpu.dimension_semantics<parallel>], iteration_bounds = array<i64: 2, 1, 4>, scalar_prefetch = 0 : i64, scratch_operands = 0 : i64, tpu.core_type = #tpu.core_type<tc>, window_params = [{transform_indices = @transform_0, window_bounds = array<i64: 1, 8, 32>}, {transform_indices = @transform_1, window_bounds = array<i64: 1, 8, 32>}, {transform_indices = @transform_2, window_bounds = array<i64: 1, 8, 32>}, {transform_indices = @transform_3, window_bounds = array<i64: 1, 32, 8>}, {transform_indices = @transform_4, window_bounds = array<i64: 1, 32, 8>}, {transform_indices = @transform_5, window_bounds = array<i64: 1, 32, 8>}, {transform_indices = @transform_6, window_bounds = array<i64: 1, 1, 8, 8>}, {transform_indices = @transform_7, window_bounds = array<i64: 1, 1, 8, 8>}, {transform_indices = @transform_8, window_bounds = array<i64: 1, 1, 8, 8>}]} {
    %c0 = arith.constant 0 : index
    %c0_0 = arith.constant 0 : index
    %c0_1 = arith.constant 0 : index
    %0 = vector.load %arg3[%c0, %c0_0, %c0_1] : memref<1x8x32xf32, #tpu.memory_space<vmem>>, vector<1x8x32xf32>
    %1 = vector.shape_cast %0 : vector<1x8x32xf32> to vector<8x32xf32>
    %c0_2 = arith.constant 0 : index
    %c0_3 = arith.constant 0 : index
    %c0_4 = arith.constant 0 : index
    %2 = vector.load %arg6[%c0_2, %c0_3, %c0_4] : memref<1x32x8xf32, #tpu.memory_space<vmem>>, vector<1x32x8xf32>
    %3 = vector.shape_cast %2 : vector<1x32x8xf32> to vector<32x8xf32>
    %cst = arith.constant dense<0.000000e+00> : vector<8x8xf32>
    %4 = tpu.matmul %1, %3, %cst {dimension_numbers = #tpu.dot_dimension_numbers<[1], [0], [0], [1], [0, 0, 1, 1], [], []>} : vector<8x32xf32>, vector<32x8xf32>, vector<8x8xf32> -> vector<8x8xf32>
    %c0_5 = arith.constant 0 : index
    %c0_6 = arith.constant 0 : index
    %c0_7 = arith.constant 0 : index
    %5 = vector.load %arg4[%c0_5, %c0_6, %c0_7] : memref<1x8x32xf32, #tpu.memory_space<vmem>>, vector<1x8x32xf32>
    %6 = vector.shape_cast %5 : vector<1x8x32xf32> to vector<8x32xf32>
    %c0_8 = arith.constant 0 : index
    %c0_9 = arith.constant 0 : index
    %c0_10 = arith.constant 0 : index
    %7 = vector.load %arg7[%c0_8, %c0_9, %c0_10] : memref<1x32x8xf32, #tpu.memory_space<vmem>>, vector<1x32x8xf32>
    %8 = vector.shape_cast %7 : vector<1x32x8xf32> to vector<32x8xf32>
    %cst_11 = arith.constant dense<0.000000e+00> : vector<8x8xf32>
    %9 = tpu.matmul %6, %8, %cst_11 {dimension_numbers = #tpu.dot_dimension_numbers<[1], [0], [0], [1], [0, 0, 1, 1], [], []>} : vector<8x32xf32>, vector<32x8xf32>, vector<8x8xf32> -> vector<8x8xf32>
    %c0_12 = arith.constant 0 : index
    %c0_13 = arith.constant 0 : index
    %c0_14 = arith.constant 0 : index
    %10 = vector.load %arg5[%c0_12, %c0_13, %c0_14] : memref<1x8x32xf32, #tpu.memory_space<vmem>>, vector<1x8x32xf32>
    %11 = vector.shape_cast %10 : vector<1x8x32xf32> to vector<8x32xf32>
    %c0_15 = arith.constant 0 : index
    %c0_16 = arith.constant 0 : index
    %c0_17 = arith.constant 0 : index
    %12 = vector.load %arg8[%c0_15, %c0_16, %c0_17] : memref<1x32x8xf32, #tpu.memory_space<vmem>>, vector<1x32x8xf32>
    %13 = vector.shape_cast %12 : vector<1x32x8xf32> to vector<32x8xf32>
    %cst_18 = arith.constant dense<0.000000e+00> : vector<8x8xf32>
    %14 = tpu.matmul %11, %13, %cst_18 {dimension_numbers = #tpu.dot_dimension_numbers<[1], [0], [0], [1], [0, 0, 1, 1], [], []>} : vector<8x32xf32>, vector<32x8xf32>, vector<8x8xf32> -> vector<8x8xf32>
    %cst_19 = arith.constant 1.250000e-01 : f32
    %15 = vector.broadcast %cst_19 : f32 to vector<8x8xf32>
    %16 = arith.mulf %4, %15 : vector<8x8xf32>
    %c0_20 = arith.constant 0 : index
    %c0_21 = arith.constant 0 : index
    %c0_22 = arith.constant 0 : index
    %c0_23 = arith.constant 0 : index
    %17 = vector.load %arg9[%c0_20, %c0_21, %c0_22, %c0_23] : memref<1x1x8x8xf32, #tpu.memory_space<vmem>>, vector<1x1x8x8xf32>
    %18 = vector.shape_cast %17 : vector<1x1x8x8xf32> to vector<8x8xf32>
    %19 = vector.shape_cast %16 : vector<8x8xf32> to vector<1x1x8x8xf32>
    tpu.vector_store %arg9[%c0_20, %c0_21, %c0_22, %c0_23], %19 {strides = array<i32>} : memref<1x1x8x8xf32, #tpu.memory_space<vmem>>, vector<1x1x8x8xf32>,
    %c0_24 = arith.constant 0 : index
    %c0_25 = arith.constant 0 : index
    %c0_26 = arith.constant 0 : index
    %c0_27 = arith.constant 0 : index
    %20 = vector.load %arg10[%c0_24, %c0_25, %c0_26, %c0_27] : memref<1x1x8x8xf32, #tpu.memory_space<vmem>>, vector<1x1x8x8xf32>
    %21 = vector.shape_cast %20 : vector<1x1x8x8xf32> to vector<8x8xf32>
    %22 = vector.shape_cast %9 : vector<8x8xf32> to vector<1x1x8x8xf32>
    tpu.vector_store %arg10[%c0_24, %c0_25, %c0_26, %c0_27], %22 {strides = array<i32>} : memref<1x1x8x8xf32, #tpu.memory_space<vmem>>, vector<1x1x8x8xf32>,
    %c0_28 = arith.constant 0 : index
    %c0_29 = arith.constant 0 : index
    %c0_30 = arith.constant 0 : index
    %c0_31 = arith.constant 0 : index
    %23 = vector.load %arg11[%c0_28, %c0_29, %c0_30, %c0_31] : memref<1x1x8x8xf32, #tpu.memory_space<vmem>>, vector<1x1x8x8xf32>
    %24 = vector.shape_cast %23 : vector<1x1x8x8xf32> to vector<8x8xf32>
    %25 = vector.shape_cast %14 : vector<8x8xf32> to vector<1x1x8x8xf32>
    tpu.vector_store %arg11[%c0_28, %c0_29, %c0_30, %c0_31], %25 {strides = array<i32>} : memref<1x1x8x8xf32, #tpu.memory_space<vmem>>, vector<1x1x8x8xf32>,
    return
  }
  func.func @transform_0(%arg0: i32, %arg1: i32, %arg2: i32) -> (i32, i32, i32) {
    %c0_i32 = arith.constant 0 : i32
    %c0_i32_0 = arith.constant 0 : i32
    return %arg0, %arg1, %c0_i32 : i32, i32, i32
  }
  func.func @transform_1(%arg0: i32, %arg1: i32, %arg2: i32) -> (i32, i32, i32) {
    %c0_i32 = arith.constant 0 : i32
    %c0_i32_0 = arith.constant 0 : i32
    return %arg0, %arg1, %c0_i32 : i32, i32, i32
  }
  func.func @transform_2(%arg0: i32, %arg1: i32, %arg2: i32) -> (i32, i32, i32) {
    %c0_i32 = arith.constant 0 : i32
    %c0_i32_0 = arith.constant 0 : i32
    return %arg0, %arg1, %c0_i32 : i32, i32, i32
  }
  func.func @transform_3(%arg0: i32, %arg1: i32, %arg2: i32) -> (i32, i32, i32) {
    %c0_i32 = arith.constant 0 : i32
    %c0_i32_0 = arith.constant 0 : i32
    %c0_i32_1 = arith.constant 0 : i32
    return %arg2, %c0_i32, %c0_i32_0 : i32, i32, i32
  }
  func.func @transform_4(%arg0: i32, %arg1: i32, %arg2: i32) -> (i32, i32, i32) {
    %c0_i32 = arith.constant 0 : i32
    %c0_i32_0 = arith.constant 0 : i32
    %c0_i32_1 = arith.constant 0 : i32
    return %arg2, %c0_i32, %c0_i32_0 : i32, i32, i32
  }
  func.func @transform_5(%arg0: i32, %arg1: i32, %arg2: i32) -> (i32, i32, i32) {
    %c0_i32 = arith.constant 0 : i32
    %c0_i32_0 = arith.constant 0 : i32
    %c0_i32_1 = arith.constant 0 : i32
    return %arg2, %c0_i32, %c0_i32_0 : i32, i32, i32
  }
  func.func @transform_6(%arg0: i32, %arg1: i32, %arg2: i32) -> (i32, i32, i32, i32) {
    %c0_i32 = arith.constant 0 : i32
    %c0_i32_0 = arith.constant 0 : i32
    return %arg0, %arg2, %arg1, %c0_i32 : i32, i32, i32, i32
  }
  func.func @transform_7(%arg0: i32, %arg1: i32, %arg2: i32) -> (i32, i32, i32, i32) {
    %c0_i32 = arith.constant 0 : i32
    %c0_i32_0 = arith.constant 0 : i32
    return %arg0, %arg2, %arg1, %c0_i32 : i32, i32, i32, i32
  }
  func.func @transform_8(%arg0: i32, %arg1: i32, %arg2: i32) -> (i32, i32, i32, i32) {
    %c0_i32 = arith.constant 0 : i32
    %c0_i32_0 = arith.constant 0 : i32
    return %arg0, %arg2, %arg1, %c0_i32 : i32, i32, i32, i32
  }
}

</mosaic_0001>

<bundles_post_ra>
// kernel: tpu_custom_call.1
= control target key start
LH: loop header
LB: loop body
LE: loop exit
PB: predicated region body
PF: predicated region fallthrough
CT: control target
= control target key end

     0   :  { %s1388_s0 = inlined_call_operand.vmem [shape: f32[2,8,32], index: 0, kind: input, shape index: {}]   ;;  %s1389_s1 = inlined_call_operand.vmem [shape: f32[2,8,32], index: 1, kind: input, shape index: {}]   ;;  %s1390_s2 = inlined_call_operand.vmem [shape: f32[2,8,32], index: 2, kind: input, shape index: {}]   ;;  %s1391_s3 = inlined_call_operand.vmem [shape: f32[4,32,8], index: 3, kind: input, shape index: {}]   ;;  %s1392_s4 = inlined_call_operand.vmem [shape: f32[4,32,8], index: 4, kind: input, shape index: {}]   ;;  %s1393_s5 = inlined_call_operand.vmem [shape: f32[4,32,8], index: 5, kind: input, shape index: {}]   ;;  %s1394_s6 = inlined_call_operand.hbm [shape: f32[2,4,8,8], index: 6, kind: output, shape index: {0}]   ;;  %s1395_s7 = inlined_call_operand.hbm [shape: f32[2,4,8,8], index: 7, kind: output, shape index: {1}]   ;;  %s1396_s8 = inlined_call_operand.hbm [shape: f32[2,4,8,8], index: 8, kind: output, shape index: {2}]  }
   0x1   :  { %1409 = sst [smem:[#allocation15_spill]] %s1388_s0 }
   0x2   :  { %1410 = sst [smem:[#allocation16_spill]] %s1391_s3 }
   0x3   :  { %14 = vsyncpa [#allocation3], 0 }
   0x4   :  { %16 = vsyncpa [#allocation3 + $0x1], 0 }
   0x5   :  { %17 = vsyncpa [#allocation5], 0 }
   0x6   :  { %19 = vsyncpa [#allocation5 + $0x1], 0  ;;  %s1160_s27 = smov 0   ;;  %s1162_s28 = smov 0  }
   0x7   :  { %s1164_s29 = smov 0   ;;  %s1166_s30 = smov 0  }
   0x8   :  { %s1168_s9 = smov 0   ;;  %s1170_s10 = smov 0  }
   0x9   :  { %s1172_s11 = smov 0   ;;  %s1174_s12 = smov 0  }
   0xa LB: > { %1411 = sst [smem:[#allocation9_spill]] %s1105_s10  ;;  %s1398_s13 = sadd.s32 4294967295, %s1113_s12   ;;  %s1113_s12 = sphi %s1174_s12, %s25_s12   ;;  %s1109_s11 = sphi %s1172_s11, %s1434_s11   ;;  %s1105_s10 = sphi %s1170_s10, %s1433_s10   ;;  %s1101_s9 = sphi %s1168_s9, %s1432_s9   ;;  %s1097_s30 = sphi %s1166_s30, %s1431_s30   ;;  %s1093_s29 = sphi %s1164_s29, %s1437_s29   ;;  %s1089_s28 = sphi %s1162_s28, %s1436_s28   ;;  %s1085_s27 = sphi %s1160_s27, %s1435_s27  }
   0xb   : > { %1412 = sst [smem:[#allocation10_spill]] %s1109_s11  ;;  %s1397_s14 = sadd.s32 4294967294, %s1113_s12  }
   0xc   : > { %s37_s15 = sadd.s32 1, %s1105_s10  ;;  %s44_s16 = sadd.s32 1, %s1109_s11 }
   0xd   : > { %p38_p0 = scmp.ge.s32.totalorder %s37_s15, 4  ;;  %p227_p1 = scmp.ne.s32.totalorder %s1093_s29, %s1089_s28 }
   0xe   : > { %p228_p2 = scmp.eq.s32.totalorder %s1398_s13, 7  ;;  %p233_p5 = scmp.ne.s32.totalorder %s1089_s28, %s1085_s27 }
   0xf   : > { %s1439_s15 = smov (%p38_p0, %s37_s15), 0  ;;  %s1441_s16 = smov (!%p38_p0, %s44_s16), %s1109_s11 }
  0x10   : > { %1413 = sst [smem:[#allocation11_spill]] %s1439_s15  ;;  %s211_s17 = ssub.s32 %s1105_s10, %s1439_s15 }
  0x11   : > { %p1213_p3 = por %p228_p2, %p227_p1  ;;  %p46_p4 = scmp.ge.s32.totalorder %s1441_s16, 2 }
  0x12   : > { %p234_p6 = scmp.eq.s32.totalorder %s1397_s14, 7  ;;  %p848_p7 = scmp.ge.s32.totalorder %s1113_s12, 1 }
  0x13   : > { %s1443_s16 = smov (%p46_p4, %s1441_s16), 0  ;;  %p366_p9 = scmp.lt.s32.totalorder %s1113_s12, 9 }
  0x14   : > { %1415 = sst [smem:[#allocation12_spill]] %s1443_s16  ;;  %p1224_p8 = por %p234_p6, %p233_p5 }
  0x15   : > { %s210_s20 = ssub.s32 %s1109_s11, %s1443_s16  ;;  %s217_s21 = sadd.s32 1, %s1093_s29 }
  0x16   : > { %s212_s22 = sor.u32 %s211_s17, %s210_s20  ;;  %p367_p10 = pnand %p848_p7, %p366_p9 }
  0x17   : > { %p215_p11 = scmp.eq.s32.totalorder %s212_s22, 0 }
  0x18   : > { %370 = sbr.rel (%p367_p10) target bundleno = 212 (0xd4), region = 44 }
  0x19   : > { %s1233_s23 = scalar_select %p215_p11, %s1093_s29, %s217_s21  }
  0x1d   : > { %p462_p12 = scmp.lt.s32.totalorder %s1097_s30, 3  ;;  %p441_p13 = scmp.lt.s32.totalorder %s1101_s9, 1  ;;  %vm482_vm0 = vcmask 261120   ;;  %vm563_vm1 = vcmask 64512  }
  0x1e   : > { %s1417_s3 = sld [smem:[#allocation16_spill]] }
  0x1f   : > { %s463_s24 = scalar_select %p462_p12, %s1097_s30, 3 }
  0x20   : > { %s442_s25 = scalar_select %p441_p13, %s1101_s9, 1 }
  0x21   : > { %s875_s26 = sshll.u32 %s463_s24, 5  ;;  %s1418_s0 = sld [smem:[#allocation15_spill]] }
  0x22   : > { %s476_s16 = scalar_lea.vmem %s1393_s5, %s875_s26  ;;  %s471_s11 = scalar_lea.vmem %s1392_s4, %s875_s26 }
  0x23   : > { %v538_v0 = vld [vmem:[%s476_s16 + $0x18] sm:$0xff]  ;;  %v537_v1 = vld [vmem:[%s476_s16 + $0x10] sm:$0xff]  ;;  %s852_s10 = sshll.u32 %s442_s25, 3  ;;  %v536_v5 = vld [vmem:[%s476_s16 + $0x8] sm:$0xff] }
  0x24   : > { %s466_s20 = scalar_lea.vmem %s1417_s3, %s875_s26  ;;  %554 = vmatpush.msra.mxu2 %v538_v0  ;;  %v510_v3 = vld [vmem:[%s471_s11 + $0x18] sm:$0xff]  ;;  %v509_v6 = vld [vmem:[%s471_s11 + $0x10] sm:$0xff]  ;;  %s461_s15 = scalar_lea.vmem %s1390_s2, %s852_s10  ;;  %v508_v8 = vld [vmem:[%s471_s11 + $0x8] sm:$0xff] }
  0x25   : > { %v481_v2 = vld [vmem:[%s466_s20 + $0x18] sm:$0xff]  ;;  %v480_v4 = vld [vmem:[%s466_s20 + $0x10] sm:$0xff]  ;;  %526 = vmatpush.msra.mxu1 %v510_v3  ;;  %v479_v7 = vld [vmem:[%s466_s20 + $0x8] sm:$0xff]  ;;  %s454_s21 = scalar_lea.vmem %s1389_s1, %s852_s10 }
  0x26   : > { %498 = vmatpush.msra.mxu0 %v481_v2  ;;  %555 = vmatpush.msra.mxu2 %v537_v1  ;;  %v535_v9 = vld [vmem:[%s476_s16] sm:$0xff]  ;;  %s1403_s16 = sand.u32 1, %s1089_s28  }
  0x27   : > { %s447_s3 = scalar_lea.vmem %s1418_s0, %s852_s10  ;;  %527 = vmatpush.msra.mxu1 %v509_v6  ;;  %v478_v10 = vld [vmem:[%s466_s20] sm:$0xff]  ;;  %s867_s10 = sshll.u32 %s1101_s9, 2 }
  0x28   : > { %499 = vmatpush.msra.mxu0 %v480_v4  ;;  %556 = vmatpush.msra.mxu2 %v536_v5  ;;  %v534_v11 = vld [vmem:[%s461_s15] sm:$0xff]  ;;  %s1261_s20 = sshll.u32 %s1403_s16, 3 }
  0x29   : > { %v477_v12 = vld [vmem:[%s447_s3] sm:$0xff]  ;;  %528 = vmatpush.msra.mxu1 %v508_v8  ;;  %s589_s3 = sadd.s32 %s1097_s30, %s867_s10  ;;  %s1404_s14 = scalar_lea.vmem [#allocation6], %s1261_s20 }
  0x2a   : > { %500 = vmatpush.msra.mxu0 %v479_v7  ;;  %v507_v13 = vld [vmem:[%s471_s11] sm:$0xff]  ;;  %557 = vmatpush.msra.mxu2 %v535_v9  ;;  %s868_s22 = sshll.u32 %s589_s3, 3  ;;  %s1419_s11 = sadd.s32 4294967295, %s1113_s12  }
  0x2b   : > { %v506_v14 = vld [vmem:[%s454_s21] sm:$0xff]  ;;  %863 = vmatmul.msk.f32.vlgmr.msra.gmra.mxu2 %vm482_vm0, %v534_v11  ;;  %529 = vmatpush.msra.mxu1 %v507_v13  ;;  %s1266_s13 = sand.u32 1, %s1419_s11   ;;  %s1271_s15 = sshll.u32 %s1404_s14, 4 }
  0x2c   : > { %501 = vmatpush.msra.mxu0 %v478_v10  ;;  %862 = vmatmul.msk.f32.vlgmr.msra.gmra.mxu1 %vm482_vm0, %v506_v14  ;;  %1420 = sst [smem:[#allocation13_spill]] %s1271_s15  ;;  %s608_s9 = scalar_lea.hbm %s1395_s7, %s868_s22 }
  0x2d   : > { %861 = vmatmul.msk.f32.vlgmr.msra.gmra.mxu0 %vm482_vm0, %v477_v12  ;;  %s591_s21 = scalar_lea.hbm %s1394_s6, %s868_s22  ;;  %s433_s16 = scalar_lea.vmem [#allocation4], %s1261_s20 }
  0x2e   : > { %s1280_s0 = sshll.u32 %s433_s16, 4  ;;  %s625_s3 = scalar_lea.hbm %s1396_s8, %s868_s22  ;;  %s611_s0 = int_to_ptr.vmem [resolvable:$true] %s1280_s0 }
  0x2f   : > { %s1285_s11 = sshll.u32 %s608_s9, 4  ;;  %s1405_s14 = scalar_lea.vmem [#allocation2], %s1261_s20  ;;  %s613_s11 = int_to_ptr.hbm [resolvable:$true] %s1285_s11 }
  0x30   : > { %s1290_s24 = sshll.u32 %s1405_s14, 4  ;;  %s1292_s17 = sshll.u32 %s591_s21, 4  ;;  %s594_s24 = int_to_ptr.vmem [resolvable:$true] %s1290_s24  ;;  %s596_s17 = int_to_ptr.hbm [resolvable:$true] %s1292_s17 }
  0x31   : > { %s1295_s25 = sshll.u32 %s625_s3, 4  ;;  %s573_s22 = scalar_lea.sflag [#allocation5], %s1266_s13 }
  0x32   : > { %1421 = sst [smem:[#allocation14_spill]] %s1295_s25  ;;  %s973_s9 = sshra.s32 %s613_s11, 4  ;;  %s974_s9 = int_to_ptr.hbm [resolvable:$true] %s973_s9 }
  0x33   : > { %s975_s26 = scalar_lea.hbm %s974_s9, 8  ;;  %s979_s10 = scalar_lea.hbm %s1395_s7, 64 }
  0x34   : > { %p976_p0 = scmp.ne.s32.totalorder %s974_s9, %s975_s26  ;;  %p980_p4 = scmp.lt.s32.totalorder %s974_s9, %s1395_s7 }
  0x35   : > { %p981_p5 = scmp.lt.s32.totalorder %s979_s10, %s975_s26 }
  0x36   : > { %p977_p1 = pnand %p976_p0, %p1213_p3 }
  0x37   : > { %p982_p6 = por %p981_p5, %p980_p4 }
  0x38   : > { %p978_p2 = pneg %p977_p1 }
  0x3a   : > { %p983_p7 = pnand %p982_p6, %p978_p2 }
  0xa9   : > { %v531_v17 = vpop.f32.mrf.mxu1 }
  0xaa   : > { %v503_v15 = vpop.f32.mrf.mxu0  ;;  %565 = vst.msk [vmem:[%s433_s16] sm:$0xff] %vm563_vm1, %v531_v17 }
  0xab   : > { %v562_v16 = vmul.f32 0.125, %v503_v15 }
  0xac   : > { %986 = shalt.err (!%p983_p7)
}
  0xad   : > { %879 = dma.vmem_to_hbm [thread:$0]  (%p1213_p3), %s611_s0, 128, %s613_s11, %s573_s22  }
  0xae   : > { %s1422_s16 = scalar_lea.vmem [#allocation2], %s1261_s20  ;;  %s1423_s21 = sand.u32 1, %s1089_s28  }
  0xaf   : > { %564 = vst.msk [vmem:[%s1422_s16] sm:$0xff] %vm563_vm1, %v562_v16  ;;  %s568_s30 = scalar_lea.sflag [#allocation3], %s1423_s21  ;;  %s1001_s14 = sshra.s32 %s596_s17, 4  ;;  %s1002_s14 = int_to_ptr.hbm [resolvable:$true] %s1001_s14 }
  0xb0   : > { %s1003_s9 = scalar_lea.hbm %s1002_s14, 8  ;;  %s1007_s3 = scalar_lea.hbm %s1394_s6, 64 }
  0xb1   : > { %p1004_p9 = scmp.ne.s32.totalorder %s1002_s14, %s1003_s9  ;;  %p1008_p12 = scmp.lt.s32.totalorder %s1002_s14, %s1394_s6 }
  0xb2   : > { %p1009_p13 = scmp.lt.s32.totalorder %s1007_s3, %s1003_s9 }
  0xb3   : > { %p1005_p10 = pnand %p1004_p9, %p1213_p3 }
  0xb4   : > { %p1010_p0 = por %p1009_p13, %p1008_p12 }
  0xb5   : > { %p1006_p11 = pneg %p1005_p10 }
  0xb7   : > { %p1011_p1 = pnand %p1010_p0, %p1006_p11 }
  0xb9   : > { %1014 = shalt.err (!%p1011_p1)
}
  0xba   : > { %s1424_s0 = sld [smem:[#allocation14_spill]]  ;;  %v559_v18 = vpop.f32.mrf.mxu2  ;;  %s1425_s11 = scalar_lea.vmem [#allocation6], %s1261_s20 }
  0xbb   : > { %878 = dma.vmem_to_hbm [thread:$0]  (%p1213_p3), %s594_s24, 128, %s596_s17, %s568_s30   ;;  %566 = vst.msk [vmem:[%s1425_s11] sm:$0xff] %vm563_vm1, %v559_v18 }
  0xbc   : > { %s1035_s9 = scalar_lea.hbm %s1396_s8, 64 }
  0xc0   : > { %s1426_s15 = int_to_ptr.hbm [resolvable:$true] %s1424_s0 }
  0xc1   : > { %s1029_s25 = sshra.s32 %s1426_s15, 4  ;;  %s1030_s25 = int_to_ptr.hbm [resolvable:$true] %s1029_s25 }
  0xc2   : > { %s1031_s16 = scalar_lea.hbm %s1030_s25, 8  ;;  %p1036_p6 = scmp.lt.s32.totalorder %s1030_s25, %s1396_s8 }
  0xc3   : > { %p1032_p2 = scmp.ne.s32.totalorder %s1030_s25, %s1031_s16  ;;  %p1037_p7 = scmp.lt.s32.totalorder %s1035_s9, %s1031_s16 }
  0xc5   : > { %p1033_p4 = pnand %p1032_p2, %p1213_p3  ;;  %p1038_p9 = por %p1037_p7, %p1036_p6 }
  0xc7   : > { %p1034_p5 = pneg %p1033_p4 }
  0xc9   : > { %p1039_p10 = pnand %p1038_p9, %p1034_p5 }
  0xcb   : > { %1042 = shalt.err (!%p1039_p10)
}
  0xcc   : > { %s1427_s20 = smov %s1426_s15  ;;  %s1428_s24 = sld [smem:[#allocation13_spill]] }
  0xd2   : > { %s1429_s17 = int_to_ptr.vmem [resolvable:$true] %s1428_s24 }
  0xd3   : > { %880 = dma.vmem_to_hbm [thread:$0]  (%p1213_p3), %s1429_s17, 128, %s1427_s20, %s573_s22  }
  0xd4 PF: > { %p894_p11 = scmp.ge.s32.totalorder %s1113_s12, 2  ;;  %s641_s30 = sand.u32 1, %s1085_s27  }
  0xd5   : > { %s642_s3 = scalar_lea.sflag [#allocation3], %s641_s30 }
  0xd6   : > { %p885_p12 = pnand %p894_p11, %p1224_p8 }
  0xd8   : > { %p886_p13 = pneg %p885_p12 }
  0xda   : > { %1076 = dma.done.wait (%p886_p13), %s642_s3, 128  }
  0xdb   : > { %1078 = vsyncadd (%p886_p13), %s642_s3, 4294967168  ;;  %s1430_s18 = sadd.s32 4294967294, %s1113_s12  }
  0xdc   : > { %s651_s13 = sand.u32 1, %s1430_s18  }
  0xdd   : > { %s652_s11 = scalar_lea.sflag [#allocation5], %s651_s13 }
  0xde   : > { %1080 = dma.done.wait (%p886_p13), %s652_s11, 256  }
  0xdf   : > { %1082 = vsyncadd (%p886_p13), %s652_s11, 4294967040  ;;  %s25_s12 = sadd.s32 1, %s1113_s12   ;;  %s1431_s30 = sld [smem:[#allocation9_spill]] }
  0xe0   : > { %p22_p3 = scmp.ge.s32.totalorder %s25_s12, 10   ;;  %s1432_s9 = sld [smem:[#allocation10_spill]] }
  0xe1   : > { %s1433_s10 = sld [smem:[#allocation11_spill]]  ;;  %s1435_s27 = smov %s1089_s28 }
  0xe2   : > { %s1434_s11 = sld [smem:[#allocation12_spill]]  ;;  %s1436_s28 = smov %s1093_s29 }
  0xe3   : > { %s1437_s29 = smov %s1233_s23  ;;  %24 = sbr.rel (!%p22_p3) target bundleno = 10 (0xa), region = 126 }
  0xe8   :  { %668 = vsyncpa [#allocation3], 1 }
  0xe9   :  { %670 = vsyncpa [#allocation3 + $0x1], 1 }
  0xea   :  { %671 = vsyncpa [#allocation5], 1 }
  0xeb   :  { %673 = vsyncpa [#allocation5 + $0x1], 1 }

</bundles_post_ra>
